<compile_context>
chip_gen: v7x
topology: tpu7x:2x2x1
jax: 0.10.0
libtpu: 0.0.40
codegen_flags: <defaults>
</compile_context>

<pallas_src>
import jax
import jax.numpy as jnp
from jax import lax
from jax.experimental import pallas as pl
from jax.experimental.pallas import tpu as pltpu
import numpy as np

CAM_CHUNK = 128  # cameras processed per inner chunk (one lane width)


def learn_pose_kernel(cam_ref, params_ref, out_ref, c_ref):
    # cam_ref:    (TB, 1)     int32  camera id per batch row (batch on sublanes)
    # params_ref: (22, N_pad) f32    rows 0-2 r^T, 3-5 t^T, 6-21 init_c2w.reshape(N,16)^T
    # out_ref:    (TB, 16)    f32    row b = c2w[b].reshape(16)  (row-major == (B,4,4))
    # c_ref:      (16, N_pad) f32    VMEM scratch: per-camera c2w, cameras lane-dense
    n_pad = params_ref.shape[1]
    tb = out_ref.shape[0]
    n_chunks = n_pad // CAM_CHUNK

    # ---- Stage 1: per-camera c2w (O(num_cams), cameras on lanes) -------------
    # Chunked over 128-camera slabs so the live set stays ~35 vregs (no spills).
    # Recomputed each grid step (cheap); this keeps the grid axis truly
    # "parallel" so v7x megacore sharding needs no cross-step scratch reuse.
    @pl.loop(0, n_chunks)
    def _(c):
        s = pl.multiple_of(c * CAM_CHUNK, CAM_CHUNK)

        def prow(idx):  # one parameter row for this camera chunk, (1, CAM_CHUNK)
            return params_ref[idx:idx + 1, pl.ds(s, CAM_CHUNK)]

        rx, ry, rz = prow(0), prow(1), prow(2)

        # Hoisted / shared products (feedback: reuse rx2.., rxy.., pre-mult by a/b).
        rx2, ry2, rz2 = rx * rx, ry * ry, rz * rz
        rxy, rxz, ryz = rx * ry, rx * rz, ry * rz
        norm2 = rx2 + ry2 + rz2
        norm = jnp.sqrt(norm2) + 1e-15                    # eps matches torch make_c2w
        inv_n = pl.reciprocal(norm, approx=False)         # EUP slot, exact
        a = jnp.sin(norm) * inv_n                         # sin|r| / |r|
        b = (1.0 - jnp.cos(norm)) * (inv_n * inv_n)       # (1 - cos|r|) / |r|^2
        a_rx, a_ry, a_rz = a * rx, a * ry, a * rz
        b_rxy, b_rxz, b_ryz = b * rxy, b * rxz, b * ryz

        # Rodrigues: R = I + a*K + b*(r r^T - |r|^2 I)   (pure VPU, no 3x3 matmul)
        R = [
            [1.0 + b * (rx2 - norm2), b_rxy - a_rz,            b_rxz + a_ry],
            [b_rxy + a_rz,            1.0 + b * (ry2 - norm2), b_ryz - a_rx],
            [b_rxz - a_ry,            b_ryz + a_rx,            1.0 + b * (rz2 - norm2)],
        ]

        # c2w[:3,:3] = R @ init_R ; c2w[:3,3] = t + init_t
        # init_c2w entries loaded on demand from VMEM to bound liveness.
        for i in range(3):
            for j in range(3):
                c_ref[4 * i + j: 4 * i + j + 1, pl.ds(s, CAM_CHUNK)] = (
                    R[i][0] * prow(6 + j)
                    + R[i][1] * prow(10 + j)
                    + R[i][2] * prow(14 + j))
            c_ref[4 * i + 3: 4 * i + 4, pl.ds(s, CAM_CHUNK)] = (
                prow(3 + i) + prow(6 + 4 * i + 3))

        # Homogeneous bottom row [0, 0, 0, 1] per camera (propagated exactly
        # by the one-hot matmul below since each one-hot row sums to 1).
        c_ref[12:15, pl.ds(s, CAM_CHUNK)] = jnp.zeros((3, CAM_CHUNK), jnp.float32)
        c_ref[15:16, pl.ds(s, CAM_CHUNK)] = jnp.ones((1, CAM_CHUNK), jnp.float32)

    # ---- Stage 2: batched expansion on the MXU (O(B) part) -------------------
    # out[b, :] = C[:, cam_id[b]] via onehot @ C^T.  The compare runs at full
    # 8x128 vreg occupancy (batch on sublanes, cameras on lanes); the result is
    # already in the row-major layout of (B, 4, 4), so no transpose is needed
    # in the kernel or in the wrapper.
    cam = cam_ref[...]                                              # (TB, 1) int32
    lane_cam = lax.broadcasted_iota(jnp.int32, (tb, n_pad), 1)      # camera idx per lane
    onehot = (lane_cam == cam).astype(jnp.float32)                  # (TB, N_pad)
    out_ref[...] = lax.dot_general(
        onehot, c_ref[...],
        dimension_numbers=(((1,), (1,)), ((), ())),                 # onehot @ C^T
        preferred_element_type=jnp.float32)


def learn_pose_forward(r_params, t_params, init_c2w, cam_id, *, block_b=None):
    """LearnPose.forward.  cam_id: int array of shape (B,) -> (B,4,4), or scalar -> (4,4)."""
    r_params = jnp.asarray(r_params, jnp.float32)
    t_params = jnp.asarray(t_params, jnp.float32)
    N = r_params.shape[0]
    if init_c2w is None:
        # Module skips the composition when init_c2w is None; composing with
        # identity is exactly equivalent.
        init_c2w = jnp.broadcast_to(jnp.eye(4, dtype=jnp.float32), (N, 4, 4))
    init_c2w = jnp.asarray(init_c2w, jnp.float32)

    cam_id = jnp.asarray(cam_id)
    squeeze = cam_id.ndim == 0
    cam_flat = jnp.atleast_1d(cam_id).astype(jnp.int32)
    B = cam_flat.shape[0]

    if block_b is None:
        # >=2 grid steps when B >= 256 (v7x: both TensorCores get work via the
        # "parallel" axis); tiles capped at 2048 rows so per-step VMEM temps
        # (one-hot + double-buffered ids/output) stay at a few MiB on all gens.
        half = pl.cdiv(pl.cdiv(B, 2), 128) * 128
        block_b = max(128, min(2048, half))
    B_pad = pl.cdiv(B, block_b) * block_b
    N_pad = pl.cdiv(N, CAM_CHUNK) * CAM_CHUNK

    # Resident (22, N_pad) parameter slab; padded cameras are all-zero (their
    # per-camera c2w is finite, and the clamped one-hot never selects them).
    params = jnp.concatenate(
        [r_params.T, t_params.T, init_c2w.reshape(N, 16).T], axis=0)      # (22, N)
    params_pad = jnp.zeros((22, N_pad), jnp.float32).at[:, :N].set(params)

    # Camera ids, batch on sublanes; clamp so untrusted ids cannot select a
    # padded column (torch would raise; we pin to the nearest valid camera).
    cam_clamped = jnp.clip(cam_flat, 0, N - 1)
    cam_pad = jnp.zeros((B_pad, 1), jnp.int32).at[:B, 0].set(cam_clamped)

    out = pl.pallas_call(
        learn_pose_kernel,
        out_shape=jax.ShapeDtypeStruct((B_pad, 16), jnp.float32),
        grid=(B_pad // block_b,),
        in_specs=[
            pl.BlockSpec((block_b, 1), lambda i: (i, 0)),      # cam ids: tile over B
            pl.BlockSpec((22, N_pad), lambda i: (0, 0)),       # params: whole, resident
        ],
        out_specs=pl.BlockSpec((block_b, 16), lambda i: (i, 0)),
        scratch_shapes=[pltpu.VMEM((16, N_pad), jnp.float32)],  # per-camera c2w
        compiler_params=pltpu.CompilerParams(
            dimension_semantics=("parallel",)),                # v7x: shard B over both TCs
    )(cam_pad, params_pad)

    # Row-major (B_pad, 16) already has the (B, 4, 4) memory layout: slice +
    # reshape only, no transpose pass over the output HBM.
    c2w = out[:B].reshape(B, 4, 4)
    if squeeze:
        c2w = c2w[0]
    return c2w


# ---------- pure-JAX reference (mirrors the PyTorch make_c2w path) ----------
def _rodrigues_ref(r):
    zero = jnp.zeros_like(r[..., 0])
    K = jnp.stack([
        jnp.stack([zero, -r[..., 2], r[..., 1]], axis=-1),
        jnp.stack([r[..., 2], zero, -r[..., 0]], axis=-1),
        jnp.stack([-r[..., 1], r[..., 0], zero], axis=-1),
    ], axis=-2)                                            # (..., 3, 3)
    norm = jnp.linalg.norm(r, axis=-1)[..., None, None] + 1e-15
    eye = jnp.eye(3, dtype=r.dtype)
    return eye + jnp.sin(norm) / norm * K + (1.0 - jnp.cos(norm)) / (norm ** 2) * (K @ K)


def ref_forward(r_params, t_params, init_c2w, cam_id):
    r = r_params[cam_id]
    t = t_params[cam_id]
    R = _rodrigues_ref(r)                                  # (B, 3, 3)
    top = jnp.concatenate([R, t[..., None]], axis=-1)      # (B, 3, 4)
    bottom = jnp.broadcast_to(
        jnp.array([0.0, 0.0, 0.0, 1.0], dtype=r.dtype), (r.shape[0], 1, 4))
    c2w = jnp.concatenate([top, bottom], axis=-2)          # (B, 4, 4)
    R_new = c2w[:, :3, :3] @ init_c2w[cam_id, :3, :3]
    t_new = c2w[:, :3, 3] + init_c2w[cam_id, :3, 3]
    return c2w.at[:, :3, :3].set(R_new).at[:, :3, 3].set(t_new)


if __name__ == "__main__":
    num_cams = 16

    key = jax.random.PRNGKey(0)
    k1, k2, k3, k4, k5 = jax.random.split(key, 5)

    # Deterministic "learned" parameters (module __init__ uses zeros; small
    # random values make the Rodrigues path non-trivial).
    r_params = 0.2 * jax.random.normal(k1, (num_cams, 3), dtype=jnp.float32)
    t_params = 0.5 * jax.random.normal(k2, (num_cams, 3), dtype=jnp.float32)

    # Deterministic init_c2w: valid SE(3) matrices from random axis-angles.
    init_rvec = 0.3 * jax.random.normal(k3, (num_cams, 3), dtype=jnp.float32)
    init_tvec = jax.random.normal(k4, (num_cams, 3), dtype=jnp.float32)
    init_R = _rodrigues_ref(init_rvec)                     # (N, 3, 3)
    init_top = jnp.concatenate([init_R, init_tvec[..., None]], axis=-1)
    init_bottom = jnp.broadcast_to(
        jnp.array([0.0, 0.0, 0.0, 1.0], dtype=jnp.float32), (num_cams, 1, 4))
    init_c2w = jnp.concatenate([init_top, init_bottom], axis=-2)  # (N, 4, 4)

    # 1) small batched case (single grid step)
    cam_id = (jnp.arange(8, dtype=jnp.int32) * 2) % num_cams
    out = jax.block_until_ready(learn_pose_forward(r_params, t_params, init_c2w, cam_id))
    ref = ref_forward(r_params, t_params, init_c2w, cam_id)
    np.testing.assert_allclose(np.asarray(out), np.asarray(ref), atol=1e-5, rtol=1e-5)

    # 2) multi-grid-step case with batch padding (2 steps of 128)
    cam_id2 = jax.random.randint(k5, (200,), 0, num_cams, dtype=jnp.int32)
    out2 = jax.block_until_ready(learn_pose_forward(r_params, t_params, init_c2w, cam_id2))
    ref2 = ref_forward(r_params, t_params, init_c2w, cam_id2)
    np.testing.assert_allclose(np.asarray(out2), np.asarray(ref2), atol=1e-5, rtol=1e-5)

    # 3) single-camera (0-d cam_id) case -> (4, 4)
    out3 = jax.block_until_ready(
        learn_pose_forward(r_params, t_params, init_c2w, jnp.int32(5)))
    ref3 = ref_forward(r_params, t_params, init_c2w, jnp.array([5], jnp.int32))[0]
    np.testing.assert_allclose(np.asarray(out3), np.asarray(ref3), atol=1e-5, rtol=1e-5)

    print("KERNEL_OK")
</pallas_src>

<mosaic_0001>
module attributes {stable_mosaic.version = 11 : i64} {
  func.func @learn_pose_kernel(%arg0: i32, %arg1: memref<128x1xi32, #tpu.memory_space<vmem>>, %arg2: memref<22x128xf32, #tpu.memory_space<vmem>>, %arg3: memref<128x16xf32, #tpu.memory_space<vmem>>, %arg4: memref<16x128xf32, #tpu.memory_space<vmem>>) attributes {dimension_semantics = [#tpu.dimension_semantics<parallel>], iteration_bounds = array<i64: 1>, scalar_prefetch = 0 : i64, scratch_operands = 1 : i64, tpu.core_type = #tpu.core_type<tc>, window_params = [{transform_indices = @transform_0, window_bounds = array<i64: 128, 1>}, {pipeline_mode = #tpu.pipeline_mode<synchronous>, transform_indices = @transform_1, window_bounds = array<i64: 22, 128>}, {transform_indices = @transform_2, window_bounds = array<i64: 128, 16>}]} {
    %c0_i32 = arith.constant 0 : i32
    %c1_i32 = arith.constant 1 : i32
    %0 = arith.muli %c0_i32, %c1_i32 : i32
    %c0_i32_0 = arith.constant 0 : i32
    %1 = arith.addi %c0_i32_0, %0 : i32
    %c128_i32 = arith.constant 128 : i32
    %2 = arith.muli %1, %c128_i32 : i32
    %3 = tpu.assume_multiple %2, 128 : i32
    %c0 = arith.constant 0 : index
    %4 = arith.index_cast %3 : i32 to index
    %5 = vector.load %arg2[%c0, %4] : memref<22x128xf32, #tpu.memory_space<vmem>>, vector<1x128xf32>
    %c1 = arith.constant 1 : index
    %6 = arith.index_cast %3 : i32 to index
    %7 = vector.load %arg2[%c1, %6] : memref<22x128xf32, #tpu.memory_space<vmem>>, vector<1x128xf32>
    %c2 = arith.constant 2 : index
    %8 = arith.index_cast %3 : i32 to index
    %9 = vector.load %arg2[%c2, %8] : memref<22x128xf32, #tpu.memory_space<vmem>>, vector<1x128xf32>
    %10 = arith.mulf %5, %5 : vector<1x128xf32>
    %11 = arith.mulf %7, %7 : vector<1x128xf32>
    %12 = arith.mulf %9, %9 : vector<1x128xf32>
    %13 = arith.mulf %5, %7 : vector<1x128xf32>
    %14 = arith.mulf %5, %9 : vector<1x128xf32>
    %15 = arith.mulf %7, %9 : vector<1x128xf32>
    %16 = arith.addf %10, %11 : vector<1x128xf32>
    %17 = arith.addf %16, %12 : vector<1x128xf32>
    %18 = math.sqrt %17 : vector<1x128xf32>
    %cst = arith.constant 1.000000e-15 : f32
    %19 = vector.broadcast %cst : f32 to vector<1x128xf32>
    %20 = arith.addf %18, %19 : vector<1x128xf32>
    %21 = tpu.reciprocal %20 : vector<1x128xf32> -> vector<1x128xf32>
    %22 = math.sin %20 : vector<1x128xf32>
    %23 = arith.mulf %22, %21 : vector<1x128xf32>
    %24 = math.cos %20 : vector<1x128xf32>
    %cst_1 = arith.constant 1.000000e+00 : f32
    %25 = vector.broadcast %cst_1 : f32 to vector<1x128xf32>
    %26 = arith.subf %25, %24 : vector<1x128xf32>
    %27 = arith.mulf %21, %21 : vector<1x128xf32>
    %28 = arith.mulf %26, %27 : vector<1x128xf32>
    %29 = arith.mulf %23, %5 : vector<1x128xf32>
    %30 = arith.mulf %23, %7 : vector<1x128xf32>
    %31 = arith.mulf %23, %9 : vector<1x128xf32>
    %32 = arith.mulf %28, %13 : vector<1x128xf32>
    %33 = arith.mulf %28, %14 : vector<1x128xf32>
    %34 = arith.mulf %28, %15 : vector<1x128xf32>
    %35 = arith.subf %10, %17 : vector<1x128xf32>
    %36 = arith.mulf %28, %35 : vector<1x128xf32>
    %cst_2 = arith.constant 1.000000e+00 : f32
    %37 = vector.broadcast %cst_2 : f32 to vector<1x128xf32>
    %38 = arith.addf %37, %36 : vector<1x128xf32>
    %39 = arith.subf %32, %31 : vector<1x128xf32>
    %40 = arith.addf %33, %30 : vector<1x128xf32>
    %41 = arith.addf %32, %31 : vector<1x128xf32>
    %42 = arith.subf %11, %17 : vector<1x128xf32>
    %43 = arith.mulf %28, %42 : vector<1x128xf32>
    %cst_3 = arith.constant 1.000000e+00 : f32
    %44 = vector.broadcast %cst_3 : f32 to vector<1x128xf32>
    %45 = arith.addf %44, %43 : vector<1x128xf32>
    %46 = arith.subf %34, %29 : vector<1x128xf32>
    %47 = arith.subf %33, %30 : vector<1x128xf32>
    %48 = arith.addf %34, %29 : vector<1x128xf32>
    %49 = arith.subf %12, %17 : vector<1x128xf32>
    %50 = arith.mulf %28, %49 : vector<1x128xf32>
    %cst_4 = arith.constant 1.000000e+00 : f32
    %51 = vector.broadcast %cst_4 : f32 to vector<1x128xf32>
    %52 = arith.addf %51, %50 : vector<1x128xf32>
    %c6 = arith.constant 6 : index
    %53 = arith.index_cast %3 : i32 to index
    %54 = vector.load %arg2[%c6, %53] : memref<22x128xf32, #tpu.memory_space<vmem>>, vector<1x128xf32>
    %55 = arith.mulf %38, %54 : vector<1x128xf32>
    %c10 = arith.constant 10 : index
    %56 = arith.index_cast %3 : i32 to index
    %57 = vector.load %arg2[%c10, %56] : memref<22x128xf32, #tpu.memory_space<vmem>>, vector<1x128xf32>
    %58 = arith.mulf %39, %57 : vector<1x128xf32>
    %59 = arith.addf %55, %58 : vector<1x128xf32>
    %c14 = arith.constant 14 : index
    %60 = arith.index_cast %3 : i32 to index
    %61 = vector.load %arg2[%c14, %60] : memref<22x128xf32, #tpu.memory_space<vmem>>, vector<1x128xf32>
    %62 = arith.mulf %40, %61 : vector<1x128xf32>
    %63 = arith.addf %59, %62 : vector<1x128xf32>
    %c0_5 = arith.constant 0 : index
    %64 = arith.index_cast %3 : i32 to index
    %65 = vector.load %arg4[%c0_5, %64] : memref<16x128xf32, #tpu.memory_space<vmem>>, vector<1x128xf32>
    tpu.vector_store %arg4[%c0_5, %64], %63 {strides = array<i32>} : memref<16x128xf32, #tpu.memory_space<vmem>>, vector<1x128xf32>,
    %c7 = arith.constant 7 : index
    %66 = arith.index_cast %3 : i32 to index
    %67 = vector.load %arg2[%c7, %66] : memref<22x128xf32, #tpu.memory_space<vmem>>, vector<1x128xf32>
    %68 = arith.mulf %38, %67 : vector<1x128xf32>
    %c11 = arith.constant 11 : index
    %69 = arith.index_cast %3 : i32 to index
    %70 = vector.load %arg2[%c11, %69] : memref<22x128xf32, #tpu.memory_space<vmem>>, vector<1x128xf32>
    %71 = arith.mulf %39, %70 : vector<1x128xf32>
    %72 = arith.addf %68, %71 : vector<1x128xf32>
    %c15 = arith.constant 15 : index
    %73 = arith.index_cast %3 : i32 to index
    %74 = vector.load %arg2[%c15, %73] : memref<22x128xf32, #tpu.memory_space<vmem>>, vector<1x128xf32>
    %75 = arith.mulf %40, %74 : vector<1x128xf32>
    %76 = arith.addf %72, %75 : vector<1x128xf32>
    %c1_6 = arith.constant 1 : index
    %77 = arith.index_cast %3 : i32 to index
    %78 = vector.load %arg4[%c1_6, %77] : memref<16x128xf32, #tpu.memory_space<vmem>>, vector<1x128xf32>
    tpu.vector_store %arg4[%c1_6, %77], %76 {strides = array<i32>} : memref<16x128xf32, #tpu.memory_space<vmem>>, vector<1x128xf32>,
    %c8 = arith.constant 8 : index
    %79 = arith.index_cast %3 : i32 to index
    %80 = vector.load %arg2[%c8, %79] : memref<22x128xf32, #tpu.memory_space<vmem>>, vector<1x128xf32>
    %81 = arith.mulf %38, %80 : vector<1x128xf32>
    %c12 = arith.constant 12 : index
    %82 = arith.index_cast %3 : i32 to index
    %83 = vector.load %arg2[%c12, %82] : memref<22x128xf32, #tpu.memory_space<vmem>>, vector<1x128xf32>
    %84 = arith.mulf %39, %83 : vector<1x128xf32>
    %85 = arith.addf %81, %84 : vector<1x128xf32>
    %c16 = arith.constant 16 : index
    %86 = arith.index_cast %3 : i32 to index
    %87 = vector.load %arg2[%c16, %86] : memref<22x128xf32, #tpu.memory_space<vmem>>, vector<1x128xf32>
    %88 = arith.mulf %40, %87 : vector<1x128xf32>
    %89 = arith.addf %85, %88 : vector<1x128xf32>
    %c2_7 = arith.constant 2 : index
    %90 = arith.index_cast %3 : i32 to index
    %91 = vector.load %arg4[%c2_7, %90] : memref<16x128xf32, #tpu.memory_space<vmem>>, vector<1x128xf32>
    tpu.vector_store %arg4[%c2_7, %90], %89 {strides = array<i32>} : memref<16x128xf32, #tpu.memory_space<vmem>>, vector<1x128xf32>,
    %c3 = arith.constant 3 : index
    %92 = arith.index_cast %3 : i32 to index
    %93 = vector.load %arg2[%c3, %92] : memref<22x128xf32, #tpu.memory_space<vmem>>, vector<1x128xf32>
    %c9 = arith.constant 9 : index
    %94 = arith.index_cast %3 : i32 to index
    %95 = vector.load %arg2[%c9, %94] : memref<22x128xf32, #tpu.memory_space<vmem>>, vector<1x128xf32>
    %96 = arith.addf %93, %95 : vector<1x128xf32>
    %c3_8 = arith.constant 3 : index
    %97 = arith.index_cast %3 : i32 to index
    %98 = vector.load %arg4[%c3_8, %97] : memref<16x128xf32, #tpu.memory_space<vmem>>, vector<1x128xf32>
    tpu.vector_store %arg4[%c3_8, %97], %96 {strides = array<i32>} : memref<16x128xf32, #tpu.memory_space<vmem>>, vector<1x128xf32>,
    %c6_9 = arith.constant 6 : index
    %99 = arith.index_cast %3 : i32 to index
    %100 = vector.load %arg2[%c6_9, %99] : memref<22x128xf32, #tpu.memory_space<vmem>>, vector<1x128xf32>
    %101 = arith.mulf %41, %100 : vector<1x128xf32>
    %c10_10 = arith.constant 10 : index
    %102 = arith.index_cast %3 : i32 to index
    %103 = vector.load %arg2[%c10_10, %102] : memref<22x128xf32, #tpu.memory_space<vmem>>, vector<1x128xf32>
    %104 = arith.mulf %45, %103 : vector<1x128xf32>
    %105 = arith.addf %101, %104 : vector<1x128xf32>
    %c14_11 = arith.constant 14 : index
    %106 = arith.index_cast %3 : i32 to index
    %107 = vector.load %arg2[%c14_11, %106] : memref<22x128xf32, #tpu.memory_space<vmem>>, vector<1x128xf32>
    %108 = arith.mulf %46, %107 : vector<1x128xf32>
    %109 = arith.addf %105, %108 : vector<1x128xf32>
    %c4 = arith.constant 4 : index
    %110 = arith.index_cast %3 : i32 to index
    %111 = vector.load %arg4[%c4, %110] : memref<16x128xf32, #tpu.memory_space<vmem>>, vector<1x128xf32>
    tpu.vector_store %arg4[%c4, %110], %109 {strides = array<i32>} : memref<16x128xf32, #tpu.memory_space<vmem>>, vector<1x128xf32>,
    %c7_12 = arith.constant 7 : index
    %112 = arith.index_cast %3 : i32 to index
    %113 = vector.load %arg2[%c7_12, %112] : memref<22x128xf32, #tpu.memory_space<vmem>>, vector<1x128xf32>
    %114 = arith.mulf %41, %113 : vector<1x128xf32>
    %c11_13 = arith.constant 11 : index
    %115 = arith.index_cast %3 : i32 to index
    %116 = vector.load %arg2[%c11_13, %115] : memref<22x128xf32, #tpu.memory_space<vmem>>, vector<1x128xf32>
    %117 = arith.mulf %45, %116 : vector<1x128xf32>
    %118 = arith.addf %114, %117 : vector<1x128xf32>
    %c15_14 = arith.constant 15 : index
    %119 = arith.index_cast %3 : i32 to index
    %120 = vector.load %arg2[%c15_14, %119] : memref<22x128xf32, #tpu.memory_space<vmem>>, vector<1x128xf32>
    %121 = arith.mulf %46, %120 : vector<1x128xf32>
    %122 = arith.addf %118, %121 : vector<1x128xf32>
    %c5 = arith.constant 5 : index
    %123 = arith.index_cast %3 : i32 to index
    %124 = vector.load %arg4[%c5, %123] : memref<16x128xf32, #tpu.memory_space<vmem>>, vector<1x128xf32>
    tpu.vector_store %arg4[%c5, %123], %122 {strides = array<i32>} : memref<16x128xf32, #tpu.memory_space<vmem>>, vector<1x128xf32>,
    %c8_15 = arith.constant 8 : index
    %125 = arith.index_cast %3 : i32 to index
    %126 = vector.load %arg2[%c8_15, %125] : memref<22x128xf32, #tpu.memory_space<vmem>>, vector<1x128xf32>
    %127 = arith.mulf %41, %126 : vector<1x128xf32>
    %c12_16 = arith.constant 12 : index
    %128 = arith.index_cast %3 : i32 to index
    %129 = vector.load %arg2[%c12_16, %128] : memref<22x128xf32, #tpu.memory_space<vmem>>, vector<1x128xf32>
    %130 = arith.mulf %45, %129 : vector<1x128xf32>
    %131 = arith.addf %127, %130 : vector<1x128xf32>
    %c16_17 = arith.constant 16 : index
    %132 = arith.index_cast %3 : i32 to index
    %133 = vector.load %arg2[%c16_17, %132] : memref<22x128xf32, #tpu.memory_space<vmem>>, vector<1x128xf32>
    %134 = arith.mulf %46, %133 : vector<1x128xf32>
    %135 = arith.addf %131, %134 : vector<1x128xf32>
    %c6_18 = arith.constant 6 : index
    %136 = arith.index_cast %3 : i32 to index
    %137 = vector.load %arg4[%c6_18, %136] : memref<16x128xf32, #tpu.memory_space<vmem>>, vector<1x128xf32>
    tpu.vector_store %arg4[%c6_18, %136], %135 {strides = array<i32>} : memref<16x128xf32, #tpu.memory_space<vmem>>, vector<1x128xf32>,
    %c4_19 = arith.constant 4 : index
    %138 = arith.index_cast %3 : i32 to index
    %139 = vector.load %arg2[%c4_19, %138] : memref<22x128xf32, #tpu.memory_space<vmem>>, vector<1x128xf32>
    %c13 = arith.constant 13 : index
    %140 = arith.index_cast %3 : i32 to index
    %141 = vector.load %arg2[%c13, %140] : memref<22x128xf32, #tpu.memory_space<vmem>>, vector<1x128xf32>
    %142 = arith.addf %139, %141 : vector<1x128xf32>
    %c7_20 = arith.constant 7 : index
    %143 = arith.index_cast %3 : i32 to index
    %144 = vector.load %arg4[%c7_20, %143] : memref<16x128xf32, #tpu.memory_space<vmem>>, vector<1x128xf32>
    tpu.vector_store %arg4[%c7_20, %143], %142 {strides = array<i32>} : memref<16x128xf32, #tpu.memory_space<vmem>>, vector<1x128xf32>,
    %c6_21 = arith.constant 6 : index
    %145 = arith.index_cast %3 : i32 to index
    %146 = vector.load %arg2[%c6_21, %145] : memref<22x128xf32, #tpu.memory_space<vmem>>, vector<1x128xf32>
    %147 = arith.mulf %47, %146 : vector<1x128xf32>
    %c10_22 = arith.constant 10 : index
    %148 = arith.index_cast %3 : i32 to index
    %149 = vector.load %arg2[%c10_22, %148] : memref<22x128xf32, #tpu.memory_space<vmem>>, vector<1x128xf32>
    %150 = arith.mulf %48, %149 : vector<1x128xf32>
    %151 = arith.addf %147, %150 : vector<1x128xf32>
    %c14_23 = arith.constant 14 : index
    %152 = arith.index_cast %3 : i32 to index
    %153 = vector.load %arg2[%c14_23, %152] : memref<22x128xf32, #tpu.memory_space<vmem>>, vector<1x128xf32>
    %154 = arith.mulf %52, %153 : vector<1x128xf32>
    %155 = arith.addf %151, %154 : vector<1x128xf32>
    %c8_24 = arith.constant 8 : index
    %156 = arith.index_cast %3 : i32 to index
    %157 = vector.load %arg4[%c8_24, %156] : memref<16x128xf32, #tpu.memory_space<vmem>>, vector<1x128xf32>
    tpu.vector_store %arg4[%c8_24, %156], %155 {strides = array<i32>} : memref<16x128xf32, #tpu.memory_space<vmem>>, vector<1x128xf32>,
    %c7_25 = arith.constant 7 : index
    %158 = arith.index_cast %3 : i32 to index
    %159 = vector.load %arg2[%c7_25, %158] : memref<22x128xf32, #tpu.memory_space<vmem>>, vector<1x128xf32>
    %160 = arith.mulf %47, %159 : vector<1x128xf32>
    %c11_26 = arith.constant 11 : index
    %161 = arith.index_cast %3 : i32 to index
    %162 = vector.load %arg2[%c11_26, %161] : memref<22x128xf32, #tpu.memory_space<vmem>>, vector<1x128xf32>
    %163 = arith.mulf %48, %162 : vector<1x128xf32>
    %164 = arith.addf %160, %163 : vector<1x128xf32>
    %c15_27 = arith.constant 15 : index
    %165 = arith.index_cast %3 : i32 to index
    %166 = vector.load %arg2[%c15_27, %165] : memref<22x128xf32, #tpu.memory_space<vmem>>, vector<1x128xf32>
    %167 = arith.mulf %52, %166 : vector<1x128xf32>
    %168 = arith.addf %164, %167 : vector<1x128xf32>
    %c9_28 = arith.constant 9 : index
    %169 = arith.index_cast %3 : i32 to index
    %170 = vector.load %arg4[%c9_28, %169] : memref<16x128xf32, #tpu.memory_space<vmem>>, vector<1x128xf32>
    tpu.vector_store %arg4[%c9_28, %169], %168 {strides = array<i32>} : memref<16x128xf32, #tpu.memory_space<vmem>>, vector<1x128xf32>,
    %c8_29 = arith.constant 8 : index
    %171 = arith.index_cast %3 : i32 to index
    %172 = vector.load %arg2[%c8_29, %171] : memref<22x128xf32, #tpu.memory_space<vmem>>, vector<1x128xf32>
    %173 = arith.mulf %47, %172 : vector<1x128xf32>
    %c12_30 = arith.constant 12 : index
    %174 = arith.index_cast %3 : i32 to index
    %175 = vector.load %arg2[%c12_30, %174] : memref<22x128xf32, #tpu.memory_space<vmem>>, vector<1x128xf32>
    %176 = arith.mulf %48, %175 : vector<1x128xf32>
    %177 = arith.addf %173, %176 : vector<1x128xf32>
    %c16_31 = arith.constant 16 : index
    %178 = arith.index_cast %3 : i32 to index
    %179 = vector.load %arg2[%c16_31, %178] : memref<22x128xf32, #tpu.memory_space<vmem>>, vector<1x128xf32>
    %180 = arith.mulf %52, %179 : vector<1x128xf32>
    %181 = arith.addf %177, %180 : vector<1x128xf32>
    %c10_32 = arith.constant 10 : index
    %182 = arith.index_cast %3 : i32 to index
    %183 = vector.load %arg4[%c10_32, %182] : memref<16x128xf32, #tpu.memory_space<vmem>>, vector<1x128xf32>
    tpu.vector_store %arg4[%c10_32, %182], %181 {strides = array<i32>} : memref<16x128xf32, #tpu.memory_space<vmem>>, vector<1x128xf32>,
    %c5_33 = arith.constant 5 : index
    %184 = arith.index_cast %3 : i32 to index
    %185 = vector.load %arg2[%c5_33, %184] : memref<22x128xf32, #tpu.memory_space<vmem>>, vector<1x128xf32>
    %c17 = arith.constant 17 : index
    %186 = arith.index_cast %3 : i32 to index
    %187 = vector.load %arg2[%c17, %186] : memref<22x128xf32, #tpu.memory_space<vmem>>, vector<1x128xf32>
    %188 = arith.addf %185, %187 : vector<1x128xf32>
    %c11_34 = arith.constant 11 : index
    %189 = arith.index_cast %3 : i32 to index
    %190 = vector.load %arg4[%c11_34, %189] : memref<16x128xf32, #tpu.memory_space<vmem>>, vector<1x128xf32>
    tpu.vector_store %arg4[%c11_34, %189], %188 {strides = array<i32>} : memref<16x128xf32, #tpu.memory_space<vmem>>, vector<1x128xf32>,
    %cst_35 = arith.constant 0.000000e+00 : f32
    %191 = vector.broadcast %cst_35 : f32 to vector<3x128xf32>
    %c12_36 = arith.constant 12 : index
    %192 = arith.index_cast %3 : i32 to index
    %193 = vector.load %arg4[%c12_36, %192] : memref<16x128xf32, #tpu.memory_space<vmem>>, vector<3x128xf32>
    tpu.vector_store %arg4[%c12_36, %192], %191 {strides = array<i32>} : memref<16x128xf32, #tpu.memory_space<vmem>>, vector<3x128xf32>,
    %cst_37 = arith.constant 1.000000e+00 : f32
    %194 = vector.broadcast %cst_37 : f32 to vector<1x128xf32>
    %c15_38 = arith.constant 15 : index
    %195 = arith.index_cast %3 : i32 to index
    %196 = vector.load %arg4[%c15_38, %195] : memref<16x128xf32, #tpu.memory_space<vmem>>, vector<1x128xf32>
    tpu.vector_store %arg4[%c15_38, %195], %194 {strides = array<i32>} : memref<16x128xf32, #tpu.memory_space<vmem>>, vector<1x128xf32>,
    %c1_i32_39 = arith.constant 1 : i32
    %c0_40 = arith.constant 0 : index
    %c0_41 = arith.constant 0 : index
    %197 = vector.load %arg1[%c0_40, %c0_41] : memref<128x1xi32, #tpu.memory_space<vmem>>, vector<128x1xi32>
    %198 = tpu.iota {dimensions = array<i32: 1>} : vector<128x128xi32>
    %199 = vector.broadcast %197 : vector<128x1xi32> to vector<128x128xi32>
    %200 = arith.cmpi eq, %198, %199 : vector<128x128xi32>
    %201 = arith.extui %200 : vector<128x128xi1> to vector<128x128xi32>
    %202 = arith.sitofp %201 : vector<128x128xi32> to vector<128x128xf32>
    %c0_42 = arith.constant 0 : index
    %c0_43 = arith.constant 0 : index
    %203 = vector.load %arg4[%c0_42, %c0_43] : memref<16x128xf32, #tpu.memory_space<vmem>>, vector<16x128xf32>
    %cst_44 = arith.constant dense<0.000000e+00> : vector<128x16xf32>
    %204 = tpu.matmul %202, %203, %cst_44 {dimension_numbers = #tpu.dot_dimension_numbers<[1], [1], [0], [0], [0, 0, 1, 0], [], []>} : vector<128x128xf32>, vector<16x128xf32>, vector<128x16xf32> -> vector<128x16xf32>
    %c0_45 = arith.constant 0 : index
    %c0_46 = arith.constant 0 : index
    %205 = vector.load %arg3[%c0_45, %c0_46] : memref<128x16xf32, #tpu.memory_space<vmem>>, vector<128x16xf32>
    tpu.vector_store %arg3[%c0_45, %c0_46], %204 {strides = array<i32>} : memref<128x16xf32, #tpu.memory_space<vmem>>, vector<128x16xf32>,
    return
  }
  func.func @transform_0(%arg0: i32) -> (i32, i32) {
    %c0_i32 = arith.constant 0 : i32
    %c0_i32_0 = arith.constant 0 : i32
    return %arg0, %c0_i32 : i32, i32
  }
  func.func @transform_1(%arg0: i32) -> (i32, i32) {
    %c0_i32 = arith.constant 0 : i32
    %c0_i32_0 = arith.constant 0 : i32
    %c0_i32_1 = arith.constant 0 : i32
    return %c0_i32, %c0_i32_0 : i32, i32
  }
  func.func @transform_2(%arg0: i32) -> (i32, i32) {
    %c0_i32 = arith.constant 0 : i32
    %c0_i32_0 = arith.constant 0 : i32
    return %arg0, %c0_i32 : i32, i32
  }
}

</mosaic_0001>

<bundles_post_ra>
// kernel: tpu_custom_call.1
= control target key start
LH: loop header
LB: loop body
LE: loop exit
PB: predicated region body
PF: predicated region fallthrough
CT: control target
= control target key end

     0   :  { %v755_v0 = vmov 0   ;;  %v756_v12 = vmov 0.0   ;;  %v757_v34 = vmov 1.0   ;;  %v758_v56 = vmov 683565275   ;;  %s1114_s0 = inlined_call_operand.vmem [shape: s32[128,1], index: 0, kind: input, shape index: {}]   ;;  %s1115_s1 = inlined_call_operand.vmem [shape: f32[22,128], index: 1, kind: input, shape index: {}]   ;;  %s1116_s2 = inlined_call_operand.vmem [shape: f32[128,16], index: 2, kind: output, shape index: {}]  }
   0x1   :  { %746 = vset.pattern.permute.xlu1 %v755_v0  ;;  %745 = vset.pattern.permute.xlu0 %v755_v0  ;;  %v359_v1 = vld [vmem:[%s1114_s0 + $0x8] sm:$0xff]  ;;  %v358_v2 = vld [vmem:[%s1114_s0] sm:$0xff]  ;;  %v368_v7 = vld [vmem:[%s1114_s0 + $0x50] sm:$0xff]  ;;  %356 = vst [vmem:[#allocation2 + $0xc] sm:$0x7] %v756_v12 }
   0x2   :  { %380 = vperm.xlu1 %746, %v359_v1   ;;  %377 = vperm.xlu0 %745, %v358_v2   ;;  %v367_v3 = vld [vmem:[%s1114_s0 + $0x48] sm:$0xff]  ;;  %v366_v4 = vld [vmem:[%s1114_s0 + $0x40] sm:$0xff]  ;;  %v360_v8 = vld [vmem:[%s1114_s0 + $0x10] sm:$0xff]  ;;  %357 = vst [vmem:[#allocation2 + $0xf] sm:$0x1] %v757_v34 }
   0x3   :  { %v794_v5 = vld [vmem:[%s1115_s1] sm:$0x1]  ;;  %v799_v6 = vld [vmem:[%s1115_s1 + $0x1] sm:$0x1]  ;;  %v810_v9 = vld [vmem:[%s1115_s1 + $0x2] sm:$0x1] }
   0x4   :  { %v814_v10 = vmul.f32 %v794_v5, %v794_v5  ;;  %v818_v11 = vmul.f32 %v799_v6, %v799_v6  ;;  %v822_v13 = vmul.f32 %v810_v9, %v810_v9  ;;  %v290_v15 = vld [vmem:[%s1115_s1 + $0x3] sm:$0x1]  ;;  %v291_v16 = vld [vmem:[%s1115_s1 + $0x9] sm:$0x1]  ;;  %v369_v17 = vld [vmem:[%s1114_s0 + $0x58] sm:$0xff] }
   0x5   :  { %v361_v18 = vld [vmem:[%s1114_s0 + $0x18] sm:$0xff]  ;;  %v292_v20 = vadd.f32 %v291_v16, %v290_v15  ;;  %v321_v24 = vld [vmem:[%s1115_s1 + $0x4] sm:$0x1]  ;;  %v322_v27 = vld [vmem:[%s1115_s1 + $0xd] sm:$0x1] }
   0x6   :  { %404 = vperm.xlu1 %746, %v367_v3   ;;  %401 = vperm.xlu0 %745, %v366_v4   ;;  %v20_v14 = vadd.f32 %v818_v11, %v814_v10  ;;  %v370_v25 = vld [vmem:[%s1114_s0 + $0x60] sm:$0xff]  ;;  %v323_v28 = vadd.f32 %v322_v27, %v321_v24  ;;  %v353_v30 = vld [vmem:[%s1115_s1 + $0x11] sm:$0x1]  ;;  %v371_v31 = vld [vmem:[%s1114_s0 + $0x68] sm:$0xff]  ;;  %v759_v58 = vmov 2475754826  }
   0x7   :  { %293 = vst [vmem:[#allocation2 + $0x3] sm:$0x1] %v292_v20  ;;  %v362_v26 = vld [vmem:[%s1114_s0 + $0x20] sm:$0xff]  ;;  %v363_v32 = vld [vmem:[%s1114_s0 + $0x28] sm:$0xff]  ;;  %v372_v36 = vld [vmem:[%s1114_s0 + $0x70] sm:$0xff] }
   0x8   :  { %v839_v19 = vadd.f32 %v20_v14, %v822_v13  ;;  %324 = vst [vmem:[#allocation2 + $0x7] sm:$0x1] %v323_v28  ;;  %v352_v29 = vld [vmem:[%s1115_s1 + $0x5] sm:$0x1]  ;;  %v364_v37 = vld [vmem:[%s1114_s0 + $0x30] sm:$0xff]  ;;  %v373_v41 = vld [vmem:[%s1114_s0 + $0x78] sm:$0xff] }
   0x9   :  { %v354_v33 = vadd.f32 %v353_v30, %v352_v29  ;;  %v365_v42 = vld [vmem:[%s1114_s0 + $0x38] sm:$0xff]  ;;  %v760_v60 = vmov 2131351028   ;;  %v761_v62 = vmov 2102212464  }
   0xa   :  { %407 = vperm.xlu1 %746, %v368_v7   ;;  %383 = vperm.xlu0 %745, %v360_v8   ;;  %747 = vrsqrt.f32 %v839_v19  ;;  %v248_v21 = vsub.f32 %v814_v10, %v839_v19  ;;  %v254_v22 = vsub.f32 %v818_v11, %v839_v19  ;;  %v260_v23 = vsub.f32 %v822_v13, %v839_v19  ;;  %v283_v11 = vld [vmem:[%s1115_s1 + $0xc] sm:$0x1]  ;;  %v286_v13 = vld [vmem:[%s1115_s1 + $0x10] sm:$0x1] }
   0xb   :  { %355 = vst [vmem:[#allocation2 + $0xb] sm:$0x1] %v354_v33  ;;  %vm24_vm0 = vcmp.eq.f32.partialorder %v839_v19, inf  ;;  %v27_v38 = vand.u32 2147483648, %v839_v19  ;;  %vm26_vm1 = vcmp.eq.f32.partialorder %v839_v19, 0.0 }
   0xc   :  { %v762_v0 = vmov 920167782   ;;  %v763_v12 = vmov 1326507024  }
   0xe   :  { %410 = vperm.xlu1 %746, %v369_v17   ;;  %386 = vperm.xlu0 %745, %v361_v18  }
  0x12   :  { %413 = vperm.xlu1 %746, %v370_v25   ;;  %389 = vperm.xlu0 %745, %v362_v26  }
  0x14   :  { %v748_v35 = vpop.eup %747 }
  0x15   :  { %v23_v39 = vmul.f32 %v748_v35, %v839_v19 }
  0x16   :  { %416 = vperm.xlu1 %746, %v371_v31   ;;  %392 = vperm.xlu0 %745, %v363_v32  }
  0x17   :  { %v25_v40 = vsel %vm24_vm0, %v839_v19, %v23_v39 }
  0x18   :  { %v28_v43 = vsel %vm26_vm1, %v27_v38, %v25_v40 }
  0x19   :  { %v890_v44 = vadd.f32 1e-15, %v28_v43 }
  0x1a   :  { %419 = vperm.xlu1 %746, %v372_v36   ;;  %395 = vperm.xlu0 %745, %v364_v37  }
  0x1b   :  { %v34_v45 = vand.u32 2139095040, %v890_v44  ;;  %v31_v47 = vand.u32 2147483647, %v890_v44  ;;  %vm33_vm9 = vcmp.lt.s32.totalorder %v890_v44, 0  ;;  %vm123_vm1 = vweird.f32 %v890_v44 }
  0x1d   :  { %v35_v46 = vshrl.u32 %v34_v45, 23  ;;  %v38_v50 = vand.u32 8388607, %v31_v47  ;;  %vm32_vm10 = vcmp.le.f32.partialorder %v31_v47, 0.7853982 }
  0x1e   :  { %422 = vperm.xlu1 %746, %v373_v41   ;;  %398 = vperm.xlu0 %745, %v365_v42  }
  0x1f   :  { %v640_v48 = vadd.s32 4294967169, %v35_v46  ;;  %v39_v53 = vor.u32 8388608, %v38_v50 }
  0x21   :  { %v41_v49 = vadd.s32 1, %v640_v48  ;;  %v79_v15 = vshll.u32 %v39_v53, 8 }
  0x23   :  { %vm42_vm2 = vcmp.gt.s32.totalorder %v41_v49, 0 }
  0x24   :  { %v43_v51 = vsel %vm42_vm2, %v41_v49, 0 }
  0x25   :  { %v45_v52 = vand.u32 31, %v43_v51  ;;  %v44_v54 = vshrl.u32 %v43_v51, 5 }
  0x27   :  { %v46_v55 = vsub.s32 32, %v45_v52  ;;  %v48_v57 = vshll.u32 %v758_v56, %v45_v52  ;;  %v51_v59 = vshll.u32 %v759_v58, %v45_v52  ;;  %v54_v61 = vshll.u32 %v760_v60, %v45_v52 }
  0x28   :  { %v57_v63 = vshll.u32 %v761_v62, %v45_v52  ;;  %v60_v1 = vshll.u32 %v762_v0, %v45_v52  ;;  %vm63_vm3 = vcmp.lt.s32.totalorder %v44_v54, 1  ;;  %vm66_vm4 = vcmp.lt.s32.totalorder %v44_v54, 4 }
  0x29   :  { %v47_v2 = vshrl.u32 %v758_v56, %v46_v55  ;;  %v49_v3 = vshrl.u32 %v759_v58, %v46_v55  ;;  %v52_v4 = vshrl.u32 %v760_v60, %v46_v55  ;;  %v55_v7 = vshrl.u32 %v761_v62, %v46_v55 }
  0x2a   :  { %v58_v8 = vshrl.u32 %v762_v0, %v46_v55  ;;  %v61_v14 = vshrl.u32 %v763_v12, %v46_v55  ;;  %vm64_vm5 = vcmp.lt.s32.totalorder %v44_v54, 2  ;;  %vm65_vm6 = vcmp.lt.s32.totalorder %v44_v54, 3 }
  0x2b   :  { %v50_v16 = vor.u32 %v49_v3, %v48_v57  ;;  %v53_v17 = vor.u32 %v52_v4, %v51_v59  ;;  %v56_v18 = vor.u32 %v55_v7, %v54_v61 }
  0x2c   :  { %v59_v20 = vor.u32 %v58_v8, %v57_v63  ;;  %v62_v24 = vor.u32 %v61_v14, %v60_v1 }
  0x2d   :  { %v67_v25 = vsel %vm63_vm3, %v47_v2, %v50_v16  ;;  %v68_v26 = vsel %vm66_vm4, %v56_v18, 2102212464  ;;  %v71_v27 = vsel %vm63_vm3, %v50_v16, %v53_v17  ;;  %v75_v28 = vsel %vm63_vm3, %v53_v17, %v56_v18 }
  0x2e   :  { %v69_v29 = vsel %vm65_vm6, %v53_v17, %v68_v26  ;;  %v72_v30 = vsel %vm66_vm4, %v59_v20, 920167782  ;;  %v76_v31 = vsel %vm66_vm4, %v62_v24, 1326507024 }
  0x2f   :  { %v73_v32 = vsel %vm65_vm6, %v56_v18, %v72_v30  ;;  %v77_v33 = vsel %vm65_vm6, %v59_v20, %v76_v31  ;;  %v70_v35 = vsel %vm64_vm5, %v67_v25, %v69_v29 }
  0x30   :  { %v74_v36 = vsel %vm64_vm5, %v71_v27, %v73_v32  ;;  %v78_v37 = vsel %vm64_vm5, %v75_v28, %v77_v33  ;;  %v86_v42 = vmul.u32 %v79_v15, %v70_v35 }
  0x31   :  { %v896_v38 = vmul.u32.u64.low %v79_v15, %v78_v37  ;;  %v897_v39 = vmul.u32.u64.high %v79_v15, %v78_v37, %v896_v38  ;;  %v899_v40 = vmul.u32.u64.low %v79_v15, %v74_v36  ;;  %v900_v41 = vmul.u32.u64.high %v79_v15, %v74_v36, %v899_v40 }
  0x32   :  { %v17_v36 = vmul.f32 %v799_v6, %v794_v5 }
  0x33   :  { %vm88_vm7 = vc.u32 %v897_v39, %v899_v40  ;;  %v89_v43 = vadd.s32 1, %v900_v41  ;;  %v87_v56 = vadd.s32 %v899_v40, %v897_v39  ;;  %v18_v39 = vmul.f32 %v810_v9, %v794_v5 }
  0x34   :  { %v19_v40 = vmul.f32 %v810_v9, %v799_v6 }
  0x35   :  { %v90_v45 = vsel %vm88_vm7, %v89_v43, %v900_v41 }
  0x36   :  { %v91_v46 = vadd.s32 %v90_v45, %v86_v42  ;;  %v374_v42 = vlaneseq }
  0x38   :  { %v92_v48 = vadd.s32 536870912, %v91_v46 }
  0x3a   :  { %v93_v49 = vshrl.u32 %v92_v48, 30 }
  0x3c   :  { %v94_v50 = vshll.u32 %v93_v49, 30  ;;  %v117_v4 = vsub.s32 4, %v93_v49 }
  0x3e   :  { %v95_v51 = vsub.s32 %v91_v46, %v94_v50  ;;  %v118_v12 = vsel %vm33_vm9, %v117_v4, %v93_v49  ;;  %v263_v49 = vld [vmem:[%s1115_s1 + $0x6] sm:$0x1]  ;;  %v265_v50 = vld [vmem:[%s1115_s1 + $0xa] sm:$0x1] }
  0x3f   :  { %v120_v16 = vsel %vm32_vm10, 0, %v118_v12 }
  0x40   :  { %v97_v52 = vsub.s32 0, %v95_v51  ;;  %v124_v17 = vadd.s32 3, %v120_v16  ;;  %v229_v20 = vand.u32 3, %v120_v16 }
  0x42   :  { %v641_v53 = vmin.u32 %v97_v52, %v95_v51  ;;  %v125_v18 = vand.u32 3, %v124_v17  ;;  %vm234_vm12 = vcmp.eq.s32.totalorder %v229_v20, 2  ;;  %vm231_vm14 = vcmp.eq.s32.totalorder %v229_v20, 0  ;;  %v305_v17 = vld [vmem:[%s1115_s1 + $0xb] sm:$0x1] }
  0x43   :  { %vm230_vm0 = vcmp.lt.s32.totalorder %v229_v20, 2 }
  0x44   :  { %v99_v54 = vclz %v641_v53  ;;  %vm130_vm11 = vcmp.eq.s32.totalorder %v125_v18, 2  ;;  %vm127_vm13 = vcmp.eq.s32.totalorder %v125_v18, 0  ;;  %vm126_vm15 = vcmp.lt.s32.totalorder %v125_v18, 2  ;;  %v308_v18 = vld [vmem:[%s1115_s1 + $0xf] sm:$0x1] }
  0x46   :  { %v642_v55 = vadd.s32 4294967294, %v99_v54 }
  0x48   :  { %vm643_vm8 = vcmp.lt.s32.totalorder %v642_v55, 0 }
  0x49   :  { %v102_v57 = vsel %vm643_vm8, 0, %v642_v55 }
  0x4a   :  { %v103_v58 = vsub.s32 32, %v102_v57  ;;  %v104_v59 = vshll.u32 %v95_v51, %v102_v57  ;;  %v107_v60 = vsub.s32 4294967266, %v102_v57  ;;  %v951_v57 = vand.u32 127, %v374_v42 }
  0x4c   :  { %v105_v61 = vshrl.u32 %v87_v56, %v103_v58  ;;  %v108_v62 = vadd.s32 127, %v107_v60  ;;  %v281_v56 = vld [vmem:[%s1115_s1 + $0x8] sm:$0x1] }
  0x4e   :  { %v106_v63 = vor.u32 %v105_v61, %v104_v59  ;;  %v109_v0 = vshll.u32 %v108_v62, 23 }
  0x50   :  { %v110_v1 = vor.u32 4788187, %v109_v0  ;;  %v113_v2 = vcvt.s32.f32 %v106_v63  ;;  %v294_v63 = vld [vmem:[%s1115_s1 + $0x6] sm:$0x1]  ;;  %v296_v0 = vld [vmem:[%s1115_s1 + $0xa] sm:$0x1] }
  0x52   :  { %v111_v3 = vand.u32 2147483647, %v110_v1 }
  0x54   :  { %v114_v7 = vmul.f32 %v113_v2, %v111_v3 }
  0x56   :  { %v115_v8 = vxor.u32 2147483648, %v114_v7 }
  0x58   :  { %v116_v14 = vsel %vm33_vm9, %v115_v8, %v114_v7  ;;  %v299_v7 = vld [vmem:[%s1115_s1 + $0xe] sm:$0x1]  ;;  %v303_v8 = vld [vmem:[%s1115_s1 + $0x7] sm:$0x1] }
  0x59   :  { %v119_v15 = vsel %vm32_vm10, %v890_v44, %v116_v14 }
  0x5a   :  { %749 = vcosq.f32 %v119_v15 }
  0x5b   :  { %751 = vsinq.f32 %v119_v15 }
  0x5c   :  { %753 = vrcp.f32 %v890_v44 }
  0x64   :  { %v750_v24 = vpop.eup %749 }
  0x65   :  { %v752_v25 = vpop.eup %751  ;;  %v131_v26 = vxor.u32 2147483648, %v750_v24 }
  0x66   :  { %v754_v47 = vpop.eup %753  ;;  %v128_v27 = vxor.u32 2147483648, %v752_v25 }
  0x67   :  { %v132_v28 = vsel %vm130_vm11, %v131_v26, %v752_v25  ;;  %v236_v29 = vsel %vm234_vm12, %v131_v26, %v752_v25  ;;  %v240_v35 = vmul.f32 %v754_v47, %v754_v47 }
  0x68   :  { %v129_v30 = vsel %vm127_vm13, %v750_v24, %v128_v27  ;;  %v233_v31 = vsel %vm231_vm14, %v750_v24, %v128_v27  ;;  %v314_v27 = vld [vmem:[%s1115_s1 + $0xc] sm:$0x1] }
  0x69   :  { %v133_v32 = vsel %vm126_vm15, %v129_v30, %v132_v28  ;;  %v237_v33 = vsel %vm230_vm0, %v233_v31, %v236_v29 }
  0x6a   :  { %v134_v37 = vsel %vm123_vm1, nan, %v133_v32  ;;  %v238_v38 = vsel %vm123_vm1, nan, %v237_v33  ;;  %v317_v32 = vld [vmem:[%s1115_s1 + $0x10] sm:$0x1]  ;;  %v325_v33 = vld [vmem:[%s1115_s1 + $0x6] sm:$0x1] }
  0x6b   :  { %v135_v41 = vmul.f32 %v754_v47, %v134_v37  ;;  %v239_v44 = vsub.f32 1.0, %v238_v38  ;;  %v312_v47 = vld [vmem:[%s1115_s1 + $0x8] sm:$0x1] }
  0x6d   :  { %v241_v43 = vmul.f32 %v240_v35, %v239_v44  ;;  %v244_v45 = vmul.f32 %v135_v41, %v810_v9  ;;  %v242_v46 = vmul.f32 %v135_v41, %v794_v5  ;;  %v243_v48 = vmul.f32 %v135_v41, %v799_v6  ;;  %v268_v5 = vld [vmem:[%s1115_s1 + $0xe] sm:$0x1]  ;;  %v272_v6 = vld [vmem:[%s1115_s1 + $0x7] sm:$0x1]  ;;  %v274_v9 = vld [vmem:[%s1115_s1 + $0xb] sm:$0x1] }
  0x6f   :  { %v245_v51 = vmul.f32 %v241_v43, %v17_v36  ;;  %v246_v52 = vmul.f32 %v241_v43, %v18_v39  ;;  %v247_v53 = vmul.f32 %v241_v43, %v19_v40  ;;  %v249_v54 = vmul.f32 %v248_v21, %v241_v43  ;;  %v277_v21 = vld [vmem:[%s1115_s1 + $0xf] sm:$0x1]  ;;  %v327_v39 = vld [vmem:[%s1115_s1 + $0xa] sm:$0x1]  ;;  %v330_v40 = vld [vmem:[%s1115_s1 + $0xe] sm:$0x1] }
  0x70   :  { %v255_v55 = vmul.f32 %v254_v22, %v241_v43  ;;  %v261_v10 = vmul.f32 %v260_v23, %v241_v43 }
  0x71   :  { %v250_v58 = vadd.f32 1.0, %v249_v54  ;;  %v251_v59 = vsub.f32 %v245_v51, %v244_v45  ;;  %v252_v60 = vadd.f32 %v246_v52, %v243_v48  ;;  %v253_v61 = vadd.f32 %v245_v51, %v244_v45  ;;  %v334_v45 = vld [vmem:[%s1115_s1 + $0x7] sm:$0x1]  ;;  %v345_v54 = vld [vmem:[%s1115_s1 + $0xc] sm:$0x1] }
  0x72   :  { %v256_v19 = vadd.f32 1.0, %v255_v55  ;;  %v257_v22 = vsub.f32 %v247_v53, %v242_v46  ;;  %v258_v23 = vsub.f32 %v246_v52, %v243_v48  ;;  %v259_v62 = vadd.f32 %v247_v53, %v242_v46  ;;  %v336_v46 = vld [vmem:[%s1115_s1 + $0xb] sm:$0x1]  ;;  %v339_v48 = vld [vmem:[%s1115_s1 + $0xf] sm:$0x1] }
  0x73   :  { %v965_v1 = vadd.f32 1.0, %v261_v10  ;;  %v264_v2 = vmul.f32 %v263_v49, %v250_v58  ;;  %v266_v3 = vmul.f32 %v265_v50, %v251_v59  ;;  %v269_v4 = vmul.f32 %v268_v5, %v252_v60  ;;  %v343_v53 = vld [vmem:[%s1115_s1 + $0x8] sm:$0x1]  ;;  %v348_v10 = vld [vmem:[%s1115_s1 + $0x10] sm:$0x1] }
  0x74   :  { %v273_v12 = vmul.f32 %v272_v6, %v250_v58  ;;  %v275_v14 = vmul.f32 %v274_v9, %v251_v59  ;;  %v278_v15 = vmul.f32 %v277_v21, %v252_v60  ;;  %v282_v16 = vmul.f32 %v281_v56, %v250_v58 }
  0x75   :  { %v267_v20 = vadd.f32 %v266_v3, %v264_v2  ;;  %v284_v24 = vmul.f32 %v283_v11, %v251_v59  ;;  %v287_v25 = vmul.f32 %v286_v13, %v252_v60  ;;  %v295_v26 = vmul.f32 %v294_v63, %v253_v61 }
  0x76   :  { %v276_v28 = vadd.f32 %v275_v14, %v273_v12  ;;  %v297_v29 = vmul.f32 %v296_v0, %v256_v19  ;;  %v300_v30 = vmul.f32 %v299_v7, %v257_v22  ;;  %v304_v31 = vmul.f32 %v303_v8, %v253_v61 }
  0x77   :  { %v270_v35 = vadd.f32 %v269_v4, %v267_v20  ;;  %v285_v36 = vadd.f32 %v284_v24, %v282_v16  ;;  %v306_v37 = vmul.f32 %v305_v17, %v256_v19  ;;  %v309_v38 = vmul.f32 %v308_v18, %v257_v22 }
  0x78   :  { %v279_v41 = vadd.f32 %v278_v15, %v276_v28  ;;  %v298_v44 = vadd.f32 %v297_v29, %v295_v26  ;;  %v313_v42 = vmul.f32 %v312_v47, %v253_v61  ;;  %v315_v43 = vmul.f32 %v314_v27, %v256_v19 }
  0x79   :  { %271 = vst [vmem:[#allocation2] sm:$0x1] %v270_v35  ;;  %v288_v49 = vadd.f32 %v287_v25, %v285_v36  ;;  %v307_v50 = vadd.f32 %v306_v37, %v304_v31  ;;  %v318_v51 = vmul.f32 %v317_v32, %v257_v22  ;;  %v326_v52 = vmul.f32 %v325_v33, %v258_v23 }
  0x7a   :  { %280 = vst [vmem:[#allocation2 + $0x1] sm:$0x1] %v279_v41  ;;  %v301_v5 = vadd.f32 %v300_v30, %v298_v44  ;;  %v316_v6 = vadd.f32 %v315_v43, %v313_v42  ;;  %v328_v9 = vmul.f32 %v327_v39, %v259_v62  ;;  %v331_v55 = vmul.f32 %v330_v40, %v965_v1 }
  0x7b   :  { %289 = vst [vmem:[#allocation2 + $0x2] sm:$0x1] %v288_v49  ;;  %v310_v21 = vadd.f32 %v309_v38, %v307_v50  ;;  %v335_v56 = vmul.f32 %v334_v45, %v258_v23  ;;  %v337_v58 = vmul.f32 %v336_v46, %v259_v62  ;;  %v340_v59 = vmul.f32 %v339_v48, %v965_v1 }
  0x7c   :  { %302 = vst [vmem:[#allocation2 + $0x4] sm:$0x1] %v301_v5  ;;  %v319_v60 = vadd.f32 %v318_v51, %v316_v6  ;;  %v329_v61 = vadd.f32 %v328_v9, %v326_v52  ;;  %v344_v11 = vmul.f32 %v343_v53, %v258_v23  ;;  %v346_v13 = vmul.f32 %v345_v54, %v259_v62 }
  0x7d   :  { %311 = vst [vmem:[#allocation2 + $0x5] sm:$0x1] %v310_v21  ;;  %v338_v63 = vadd.f32 %v337_v58, %v335_v56  ;;  %v349_v0 = vmul.f32 %v348_v10, %v965_v1 }
  0x7e   :  { %320 = vst [vmem:[#allocation2 + $0x6] sm:$0x1] %v319_v60  ;;  %v332_v2 = vadd.f32 %v331_v55, %v329_v61  ;;  %v347_v3 = vadd.f32 %v346_v13, %v344_v11 }
  0x7f   :  { %v341_v4 = vadd.f32 %v340_v59, %v338_v63 }
  0x80   :  { %333 = vst [vmem:[#allocation2 + $0x8] sm:$0x1] %v332_v2  ;;  %v350_v7 = vadd.f32 %v349_v0, %v347_v3 }
  0x81   :  { %v381_v19 = vpop.permute.xlu1 %380  ;;  %v378_v22 = vpop.permute.xlu0 %377  ;;  %342 = vst [vmem:[#allocation2 + $0x9] sm:$0x1] %v341_v4 }
  0x82   :  { %vm424_vm2 = vcmp.eq.s32.totalorder %v951_v57, %v378_v22  ;;  %351 = vst [vmem:[#allocation2 + $0xa] sm:$0x1] %v350_v7  ;;  %vm425_vm6 = vcmp.eq.s32.totalorder %v951_v57, %v381_v19 }
  0x83   :  { %702 = vmatprep.mubr.msk.f32.mxu0 %vm424_vm2, %v757_v34  ;;  %vm619_vm2 = vcmask 130048  }
  0x85   :  { %v405_v8 = vpop.permute.xlu1 %404  ;;  %v402_v12 = vpop.permute.xlu0 %401  ;;  %v472_v1 = vld [vmem:[#allocation2] sm:$0xff] }
  0x86   :  { %vm432_vm3 = vcmp.eq.s32.totalorder %v951_v57, %v402_v12  ;;  %vm433_vm7 = vcmp.eq.s32.totalorder %v951_v57, %v405_v8 }
  0x87   :  { %714 = vmatprep.mubr.msk.f32.mxu1 %vm432_vm3, %v757_v34 }
  0x89   :  { %v408_v23 = vpop.permute.xlu1 %407  ;;  %v384_v62 = vpop.permute.xlu0 %383  ;;  %v473_v16 = vld [vmem:[#allocation2 + $0x8] sm:$0xff] }
  0x8a   :  { %v726_v17 = vpack.c.bf16 %v473_v16, %v472_v1  ;;  %vm434_vm4 = vcmp.eq.s32.totalorder %v951_v57, %v408_v23  ;;  %vm426_vm5 = vcmp.eq.s32.totalorder %v951_v57, %v384_v62 }
  0x8c   :  { %727 = vmatprep.subr.bf16.mxu0 %v726_v17  ;;  %730 = vmatprep.subr.bf16.mxu1 %v726_v17 }
  0x8d   :  { %v411_v14 = vpop.permute.xlu1 %410  ;;  %v387_v15 = vpop.permute.xlu0 %386  ;;  %729 = vmatpush3.bf16.xpose.msra.mxu0 %v726_v17  ;;  %731 = vmatpush3.bf16.xpose.msra.mxu1 %v726_v17 }
  0x8e   :  { %vm435_vm8 = vcmp.eq.s32.totalorder %v951_v57, %v411_v14  ;;  %vm427_vm9 = vcmp.eq.s32.totalorder %v951_v57, %v387_v15 }
  0x91   :  { %v414_v18 = vpop.permute.xlu1 %413  ;;  %v390_v20 = vpop.permute.xlu0 %389 }
  0x92   :  { %vm436_vm10 = vcmp.eq.s32.totalorder %v951_v57, %v414_v18  ;;  %vm428_vm11 = vcmp.eq.s32.totalorder %v951_v57, %v390_v20 }
  0x94   :  { %703 = vmatmul.mubr.msk.f32.vlgmr.msra.gmra.mrb[0].mxu0 %vm425_vm6, %v757_v34  ;;  %715 = vmatmul.mubr.msk.f32.vlgmr.msra.gmra.mrb[0].mxu1 %vm433_vm7, %v757_v34 }
  0x95   :  { %v417_v24 = vpop.permute.xlu1 %416  ;;  %v393_v25 = vpop.permute.xlu0 %392  ;;  %705 = vmatprep.mubr.msk.f32.mxu0 %vm426_vm5, %v757_v34  ;;  %717 = vmatprep.mubr.msk.f32.mxu1 %vm434_vm4, %v757_v34 }
  0x96   :  { %vm437_vm12 = vcmp.eq.s32.totalorder %v951_v57, %v417_v24  ;;  %vm429_vm13 = vcmp.eq.s32.totalorder %v951_v57, %v393_v25 }
  0x98   :  { %706 = vmatmul.mubr.msk.f32.gmra.mrb[2].mxu0 %vm427_vm9, %v757_v34  ;;  %718 = vmatmul.mubr.msk.f32.gmra.mrb[2].mxu1 %vm435_vm8, %v757_v34 }
  0x99   :  { %v420_v26 = vpop.permute.xlu1 %419  ;;  %v396_v47 = vpop.permute.xlu0 %395  ;;  %708 = vmatprep.mubr.msk.f32.mxu0 %vm428_vm11, %v757_v34  ;;  %720 = vmatprep.mubr.msk.f32.mxu1 %vm436_vm10, %v757_v34 }
  0x9a   :  { %vm438_vm14 = vcmp.eq.s32.totalorder %v951_v57, %v420_v26  ;;  %vm430_vm15 = vcmp.eq.s32.totalorder %v951_v57, %v396_v47 }
  0x9c   :  { %709 = vmatmul.mubr.msk.f32.gmra.mrb[4].mxu0 %vm429_vm13, %v757_v34  ;;  %721 = vmatmul.mubr.msk.f32.gmra.mrb[4].mxu1 %vm437_vm12, %v757_v34 }
  0x9d   :  { %v423_v27 = vpop.permute.xlu1 %422  ;;  %v399_v28 = vpop.permute.xlu0 %398  ;;  %711 = vmatprep.mubr.msk.f32.mxu0 %vm430_vm15, %v757_v34  ;;  %723 = vmatprep.mubr.msk.f32.mxu1 %vm438_vm14, %v757_v34 }
  0x9e   :  { %vm439_vm0 = vcmp.eq.s32.totalorder %v951_v57, %v423_v27  ;;  %vm431_vm1 = vcmp.eq.s32.totalorder %v951_v57, %v399_v28 }
  0xa0   :  { %712 = vmatmul.mubr.msk.f32.gmra.mrb[6].mxu0 %vm431_vm1, %v757_v34  ;;  %724 = vmatmul.mubr.msk.f32.gmra.mrb[6].mxu1 %vm439_vm0, %v757_v34 }
 0x167   :  { %v704_v29 = vpop.f32.mrb[0].mxu0  ;;  %v716_v30 = vpop.f32.mrb[0].mxu1 }
 0x168   :  { %621 = vst.msk [vmem:[%s1116_s2 + $0x8] sm:$0xff] %vm619_vm2, %v704_v29  ;;  %629 = vst.msk [vmem:[%s1116_s2 + $0x48] sm:$0xff] %vm619_vm2, %v716_v30  ;;  %v540_v31 = vpop.f32.mrb[1].mxu0  ;;  %v580_v32 = vpop.f32.mrb[1].mxu1 }
 0x169   :  { %620 = vst.msk [vmem:[%s1116_s2] sm:$0xff] %vm619_vm2, %v540_v31  ;;  %628 = vst.msk [vmem:[%s1116_s2 + $0x40] sm:$0xff] %vm619_vm2, %v580_v32 }
 0x16b   :  { %v707_v34 = vpop.f32.mrb[2].mxu0  ;;  %v719_v57 = vpop.f32.mrb[2].mxu1 }
 0x16c   :  { %623 = vst.msk [vmem:[%s1116_s2 + $0x18] sm:$0xff] %vm619_vm2, %v707_v34  ;;  %631 = vst.msk [vmem:[%s1116_s2 + $0x58] sm:$0xff] %vm619_vm2, %v719_v57  ;;  %v550_v33 = vpop.f32.mrb[3].mxu0  ;;  %v590_v35 = vpop.f32.mrb[3].mxu1 }
 0x16d   :  { %622 = vst.msk [vmem:[%s1116_s2 + $0x10] sm:$0xff] %vm619_vm2, %v550_v33  ;;  %630 = vst.msk [vmem:[%s1116_s2 + $0x50] sm:$0xff] %vm619_vm2, %v590_v35 }
 0x16f   :  { %v710_v36 = vpop.f32.mrb[4].mxu0  ;;  %v722_v37 = vpop.f32.mrb[4].mxu1 }
 0x170   :  { %625 = vst.msk [vmem:[%s1116_s2 + $0x28] sm:$0xff] %vm619_vm2, %v710_v36  ;;  %633 = vst.msk [vmem:[%s1116_s2 + $0x68] sm:$0xff] %vm619_vm2, %v722_v37  ;;  %v560_v38 = vpop.f32.mrb[5].mxu0  ;;  %v600_v39 = vpop.f32.mrb[5].mxu1 }
 0x171   :  { %624 = vst.msk [vmem:[%s1116_s2 + $0x20] sm:$0xff] %vm619_vm2, %v560_v38  ;;  %632 = vst.msk [vmem:[%s1116_s2 + $0x60] sm:$0xff] %vm619_vm2, %v600_v39 }
 0x173   :  { %v713_v40 = vpop.f32.mrb[6].mxu0  ;;  %v725_v41 = vpop.f32.mrb[6].mxu1 }
 0x174   :  { %627 = vst.msk [vmem:[%s1116_s2 + $0x38] sm:$0xff] %vm619_vm2, %v713_v40  ;;  %635 = vst.msk [vmem:[%s1116_s2 + $0x78] sm:$0xff] %vm619_vm2, %v725_v41  ;;  %v570_v44 = vpop.f32.mrb[7].mxu0  ;;  %v610_v42 = vpop.f32.mrb[7].mxu1 }
 0x175   :  { %626 = vst.msk [vmem:[%s1116_s2 + $0x30] sm:$0xff] %vm619_vm2, %v570_v44  ;;  %634 = vst.msk [vmem:[%s1116_s2 + $0x70] sm:$0xff] %vm619_vm2, %v610_v42 }

</bundles_post_ra>
